<compile_context>
chip_gen: v6e
topology: v6e:2x2x1
jax: 0.10.0
libtpu: 0.0.40
codegen_flags: <defaults>
</compile_context>

<pallas_src>
import functools
import math

import jax
import jax.numpy as jnp
import numpy as np
from jax.experimental import pallas as pl
from jax.experimental.pallas import tpu as pltpu


def _round_up(a, m):
    return -(-a // m) * m


def _upcnl_kernel(x_ref, g_ref, w_ref, b_ref, o_ref, z_ref, *, K, bbH, neg_slope):
    """One batch block per grid step.

    x_ref: (bb*H,  WCp)        lane-dense input rows of bb images
    g_ref: (bb*Hop, K*bb*H)    0/1 selection (H-upsample + dy taps + padding)
    w_ref: (K, WCp, NCp)       banded weights (W-upsample + dx taps folded)
    b_ref: (1, NCp)            bias tiled across output columns (f32)
    o_ref: (bb*Hop, NCp)       lane-dense output block
    z_ref: (K*bb*H, NCp)       VMEM scratch: stage-1 results stacked over dy
    """
    x = x_ref[...]
    for dy in range(K):  # static unroll: K independent stage-1 MXU matmuls
        z = jnp.dot(x, w_ref[dy], preferred_element_type=jnp.float32)
        z_ref[pl.ds(dy * bbH, bbH), :] = z.astype(z_ref.dtype)
    # single fat stage-2 matmul: (bb*Hop, K*bb*H) @ (K*bb*H, NCp)
    acc = jnp.dot(g_ref[...], z_ref[...], preferred_element_type=jnp.float32)
    acc = acc + b_ref[...]                         # bias
    acc = jnp.maximum(acc, neg_slope * acc)        # LeakyReLU(0.01), single vmax
    o_ref[...] = acc.astype(o_ref.dtype)


def upcnl_forward(x_nchw, weight_oihw, bias, *, scale_factor=2, stride=1,
                  padding=0, neg_slope=0.01, batch_block=None,
                  compute_dtype=jnp.bfloat16):
    """Forward pass of UpCNL (mode='nearest', normalization=None).

    x_nchw:      (B, Cin, H, W)     float32
    weight_oihw: (Cout, Cin, K, K)  float32 (PyTorch layout)
    bias:        (Cout,)            float32
    returns:     (B, Cout, Ho, Wo)  same dtype as x (NCHW, matching PyTorch)
    """
    assert stride == 1, "only stride=1 implemented"
    s = int(scale_factor)
    assert s == scale_factor and s >= 1, \
        "nearest-upsample fold requires an integer scale_factor"

    B, Cin, H, W = x_nchw.shape
    Cout, Cin_w, K, K2 = weight_oihw.shape
    assert Cin_w == Cin and K == K2
    p = padding
    Hu, Wu = s * H, s * W
    Ho, Wo = Hu + 2 * p - K + 1, Wu + 2 * p - K + 1
    assert Ho > 0 and Wo > 0

    # ---- lane/sublane-friendly padded extents --------------------------------
    WC = W * Cin
    WCp = _round_up(WC, 128)                  # lane-dense stage-1 contraction
    Ho_pad = _round_up(Ho, 8)                 # sublane-aligned output rows
    lane_mult = 128 // math.gcd(Cout, 128)    # make Wo_pad*Cout % 128 == 0
    Wo_pad = _round_up(Wo, lane_mult)
    if Wo_pad * Cout > 4 * max(Wo * Cout, 128):   # guard pathological padding
        Wo_pad = Wo
    NCp = Wo_pad * Cout

    # ---- batch blocking (two "parallel" steps for dual-TC chips if legal) ----
    if batch_block is None:
        bb = B
        if B % 2 == 0 and ((B // 2) * H) % 8 == 0:
            bb = B // 2
    else:
        bb = int(batch_block)
    assert B % bb == 0
    nb = B // bb
    if nb > 1:
        assert (bb * H) % 8 == 0, "blocked sublane dim (bb*H) must be multiple of 8"
    bbH = bb * H

    # ---- lane-major input rows, zero-padded to WCp lanes ----------------------
    x_lm = jnp.transpose(x_nchw, (0, 2, 3, 1)).reshape(B * H, WC)
    x_lm = jnp.pad(x_lm, ((0, 0), (0, WCp - WC))).astype(compute_dtype)

    # ---- trace-time constant structure matrices -------------------------------
    # g[dy, y, h] = 1 iff upsampled row (y+dy-p) is in range and comes from
    # original row h = (y+dy-p)//s.  Rows y >= Ho (padding) stay all-zero.
    g_np = np.zeros((K, Ho_pad, H), np.float32)
    for dy in range(K):
        for y in range(Ho):
            Y = y + dy - p
            if 0 <= Y < Hu:
                g_np[dy, y, Y // s] = 1.0
    eye_b = np.eye(bb, dtype=np.float32)
    # G[a*Hop + y, dy*bb*H + a*H + h] = g[dy, y, h]  (block-diag over images)
    G_np = np.einsum("ab,kyh->aykbh", eye_b, g_np).reshape(bb * Ho_pad, K * bbH)
    G = jnp.asarray(G_np, dtype=compute_dtype)

    # sel[dx, j, x] = 1 iff upsampled col (x+dx-p) is in range and comes from
    # original col j = (x+dx-p)//s.  Columns x >= Wo (padding) stay zero.
    sel_np = np.zeros((K, W, Wo_pad), np.float32)
    for dx in range(K):
        for xo in range(Wo):
            X = xo + dx - p
            if 0 <= X < Wu:
                sel_np[dx, X // s, xo] = 1.0
    # w_up[dy, j*Cin+ci, x*Cout+co] = sum_dx sel[dx,j,x] * w[co,ci,dy,dx]
    w_up = jnp.einsum("djx,oikd->kjixo", jnp.asarray(sel_np), weight_oihw,
                      precision=jax.lax.Precision.HIGHEST)
    w_up = w_up.reshape(K, WC, NCp)
    w_up = jnp.pad(w_up, ((0, 0), (0, WCp - WC), (0, 0))).astype(compute_dtype)

    bias_row = jnp.tile(bias, Wo_pad).reshape(1, NCp).astype(jnp.float32)

    # ---- VMEM budget & cost estimate derived from actual sizes ----------------
    itm = np.dtype(compute_dtype).itemsize
    blk_bytes = (bbH * WCp * itm                    # x block
                 + bb * Ho_pad * K * bbH * itm      # G
                 + K * WCp * NCp * itm              # w_up
                 + NCp * 4                          # bias
                 + bb * Ho_pad * NCp * 4)           # output block
    scratch_bytes = K * bbH * NCp * itm
    vmem_need = 2 * blk_bytes + scratch_bytes       # x2 for pipeline buffers
    vmem_limit = int(min(max(4 * vmem_need, 16 * 2 ** 20), 64 * 2 ** 20))

    flops = 2 * K * B * H * WCp * NCp + 2 * B * Ho_pad * K * bbH * NCp
    bytes_accessed = int(x_lm.size * itm + nb * (G.size + w_up.size) * itm
                         + nb * NCp * 4 + B * Ho_pad * NCp * 4)

    kernel = functools.partial(_upcnl_kernel, K=K, bbH=bbH, neg_slope=neg_slope)

    out2d = pl.pallas_call(
        kernel,
        out_shape=jax.ShapeDtypeStruct((B * Ho_pad, NCp), x_nchw.dtype),
        grid=(nb,),
        in_specs=[
            pl.BlockSpec((bbH, WCp), lambda i: (i, 0)),
            pl.BlockSpec((bb * Ho_pad, K * bbH), lambda i: (0, 0)),
            pl.BlockSpec((K, WCp, NCp), lambda i: (0, 0, 0)),
            pl.BlockSpec((1, NCp), lambda i: (0, 0)),
        ],
        out_specs=pl.BlockSpec((bb * Ho_pad, NCp), lambda i: (i, 0)),
        scratch_shapes=[pltpu.VMEM((K * bbH, NCp), compute_dtype)],
        compiler_params=pltpu.CompilerParams(
            dimension_semantics=("parallel",),
            vmem_limit_bytes=vmem_limit,
            # let XLA fuse the NCHW->lane-major transpose / weight prep into
            # the pallas_call inputs instead of materialising them separately.
            allow_input_fusion=[True, True, True, True],
        ),
        cost_estimate=pl.CostEstimate(flops=int(flops), transcendentals=0,
                                      bytes_accessed=bytes_accessed),
    )(x_lm, G, w_up, bias_row)

    # (B*Hop, Wo_pad*Cout) -> (B, Cout, Ho, Wo); padded rows/cols sliced off.
    out = out2d.reshape(B, Ho_pad, Wo_pad, Cout)[:, :Ho, :Wo, :]
    return out.transpose(0, 3, 1, 2)


def _reference(x_nchw, weight_oihw, bias, *, scale_factor, padding, neg_slope):
    """Pure-JAX reference (mirrors PyTorch semantics)."""
    x = jnp.repeat(x_nchw, scale_factor, axis=2)
    x = jnp.repeat(x, scale_factor, axis=3)
    y = jax.lax.conv_general_dilated(
        x, weight_oihw, window_strides=(1, 1),
        padding=[(padding, padding), (padding, padding)],
        dimension_numbers=("NCHW", "OIHW", "NCHW"),
        precision=jax.lax.Precision.HIGHEST)
    y = y + bias.reshape(1, -1, 1, 1)
    return jnp.where(y >= 0, y, neg_slope * y)


if __name__ == "__main__":
    # Small shapes consistent with UpCNL defaults:
    # in_channels=4, out_channels=8, scale_factor=2, kernel_size=3,
    # stride=1, padding=0, normalization=None.
    B, Cin, H, W = 2, 4, 16, 16
    Cout, K = 8, 3
    scale_factor, padding = 2, 0

    key = jax.random.PRNGKey(0)
    kx, kw, kb = jax.random.split(key, 3)
    x = jax.random.normal(kx, (B, Cin, H, W), dtype=jnp.float32)
    weight = jax.random.normal(kw, (Cout, Cin, K, K), dtype=jnp.float32) * 0.1
    bias = jax.random.normal(kb, (Cout,), dtype=jnp.float32) * 0.1

    ref = _reference(x, weight, bias, scale_factor=scale_factor,
                     padding=padding, neg_slope=0.01)
    expected = (B, Cout, scale_factor * H + 2 * padding - K + 1,
                scale_factor * W + 2 * padding - K + 1)
    assert ref.shape == expected

    # Performance path: bf16 operands, f32 MXU accumulation (looser tolerance).
    fwd_bf16 = jax.jit(functools.partial(
        upcnl_forward, scale_factor=scale_factor, padding=padding,
        compute_dtype=jnp.bfloat16))
    out_bf16 = jax.block_until_ready(fwd_bf16(x, weight, bias))
    assert out_bf16.shape == expected
    assert jnp.allclose(out_bf16, ref, atol=5e-2, rtol=5e-2), \
        "bf16 path mismatch vs reference"

    # f32 compute path: tight-tolerance correctness check of the structure fold.
    fwd_f32 = jax.jit(functools.partial(
        upcnl_forward, scale_factor=scale_factor, padding=padding,
        compute_dtype=jnp.float32))
    out_f32 = jax.block_until_ready(fwd_f32(x, weight, bias))
    assert out_f32.shape == expected
    assert jnp.allclose(out_f32, ref, atol=2e-3, rtol=2e-3), \
        "f32 path mismatch vs reference"

    print("KERNEL_OK")
</pallas_src>

<mosaic_0001>
module attributes {stable_mosaic.version = 11 : i64} {
  func.func @_upcnl_kernel(%arg0: i32, %arg1: memref<16x128xbf16, #tpu.memory_space<vmem>>, %arg2: memref<32x48xbf16, #tpu.memory_space<vmem>>, %arg3: memref<3x128x256xbf16, #tpu.memory_space<vmem>>, %arg4: memref<1x256xf32, #tpu.memory_space<vmem>>, %arg5: memref<32x256xf32, #tpu.memory_space<vmem>>, %arg6: memref<48x256xbf16, #tpu.memory_space<vmem>>) attributes {dimension_semantics = [#tpu.dimension_semantics<parallel>], iteration_bounds = array<i64: 2>, scalar_prefetch = 0 : i64, scratch_operands = 1 : i64, tpu.core_type = #tpu.core_type<tc>, window_params = [{transform_indices = @transform_0, window_bounds = array<i64: 16, 128>}, {pipeline_mode = #tpu.pipeline_mode<synchronous>, transform_indices = @transform_1, window_bounds = array<i64: 32, 48>}, {pipeline_mode = #tpu.pipeline_mode<synchronous>, transform_indices = @transform_2, window_bounds = array<i64: 3, 128, 256>}, {pipeline_mode = #tpu.pipeline_mode<synchronous>, transform_indices = @transform_3, window_bounds = array<i64: 1, 256>}, {transform_indices = @transform_4, window_bounds = array<i64: 32, 256>}]} {
    %c0 = arith.constant 0 : index
    %c0_0 = arith.constant 0 : index
    %0 = vector.load %arg1[%c0, %c0_0] : memref<16x128xbf16, #tpu.memory_space<vmem>>, vector<16x128xbf16>
    %c0_1 = arith.constant 0 : index
    %c0_2 = arith.constant 0 : index
    %c0_3 = arith.constant 0 : index
    %1 = vector.load %arg3[%c0_1, %c0_2, %c0_3] : memref<3x128x256xbf16, #tpu.memory_space<vmem>>, vector<1x128x256xbf16>
    %2 = vector.shape_cast %1 : vector<1x128x256xbf16> to vector<128x256xbf16>
    %cst = arith.constant dense<0.000000e+00> : vector<16x256xf32>
    %3 = tpu.matmul %0, %2, %cst {dimension_numbers = #tpu.dot_dimension_numbers<[1], [0], [0], [1], [0, 0, 1, 1], [], []>} : vector<16x128xbf16>, vector<128x256xbf16>, vector<16x256xf32> -> vector<16x256xf32>
    %4 = arith.truncf %3 : vector<16x256xf32> to vector<16x256xbf16>
    %c0_4 = arith.constant 0 : index
    %c0_5 = arith.constant 0 : index
    %5 = vector.load %arg6[%c0_4, %c0_5] : memref<48x256xbf16, #tpu.memory_space<vmem>>, vector<16x256xbf16>
    tpu.vector_store %arg6[%c0_4, %c0_5], %4 {strides = array<i32>} : memref<48x256xbf16, #tpu.memory_space<vmem>>, vector<16x256xbf16>,
    %c1 = arith.constant 1 : index
    %c0_6 = arith.constant 0 : index
    %c0_7 = arith.constant 0 : index
    %6 = vector.load %arg3[%c1, %c0_6, %c0_7] : memref<3x128x256xbf16, #tpu.memory_space<vmem>>, vector<1x128x256xbf16>
    %7 = vector.shape_cast %6 : vector<1x128x256xbf16> to vector<128x256xbf16>
    %cst_8 = arith.constant dense<0.000000e+00> : vector<16x256xf32>
    %8 = tpu.matmul %0, %7, %cst_8 {dimension_numbers = #tpu.dot_dimension_numbers<[1], [0], [0], [1], [0, 0, 1, 1], [], []>} : vector<16x128xbf16>, vector<128x256xbf16>, vector<16x256xf32> -> vector<16x256xf32>
    %9 = arith.truncf %8 : vector<16x256xf32> to vector<16x256xbf16>
    %c16 = arith.constant 16 : index
    %c0_9 = arith.constant 0 : index
    %10 = vector.load %arg6[%c16, %c0_9] : memref<48x256xbf16, #tpu.memory_space<vmem>>, vector<16x256xbf16>
    tpu.vector_store %arg6[%c16, %c0_9], %9 {strides = array<i32>} : memref<48x256xbf16, #tpu.memory_space<vmem>>, vector<16x256xbf16>,
    %c2 = arith.constant 2 : index
    %c0_10 = arith.constant 0 : index
    %c0_11 = arith.constant 0 : index
    %11 = vector.load %arg3[%c2, %c0_10, %c0_11] : memref<3x128x256xbf16, #tpu.memory_space<vmem>>, vector<1x128x256xbf16>
    %12 = vector.shape_cast %11 : vector<1x128x256xbf16> to vector<128x256xbf16>
    %cst_12 = arith.constant dense<0.000000e+00> : vector<16x256xf32>
    %13 = tpu.matmul %0, %12, %cst_12 {dimension_numbers = #tpu.dot_dimension_numbers<[1], [0], [0], [1], [0, 0, 1, 1], [], []>} : vector<16x128xbf16>, vector<128x256xbf16>, vector<16x256xf32> -> vector<16x256xf32>
    %14 = arith.truncf %13 : vector<16x256xf32> to vector<16x256xbf16>
    %c32 = arith.constant 32 : index
    %c0_13 = arith.constant 0 : index
    %15 = vector.load %arg6[%c32, %c0_13] : memref<48x256xbf16, #tpu.memory_space<vmem>>, vector<16x256xbf16>
    tpu.vector_store %arg6[%c32, %c0_13], %14 {strides = array<i32>} : memref<48x256xbf16, #tpu.memory_space<vmem>>, vector<16x256xbf16>,
    %c0_14 = arith.constant 0 : index
    %c0_15 = arith.constant 0 : index
    %16 = vector.load %arg2[%c0_14, %c0_15] : memref<32x48xbf16, #tpu.memory_space<vmem>>, vector<32x48xbf16>
    %c0_16 = arith.constant 0 : index
    %c0_17 = arith.constant 0 : index
    %17 = vector.load %arg6[%c0_16, %c0_17] : memref<48x256xbf16, #tpu.memory_space<vmem>>, vector<48x256xbf16>
    %cst_18 = arith.constant dense<0.000000e+00> : vector<32x256xf32>
    %18 = tpu.matmul %16, %17, %cst_18 {dimension_numbers = #tpu.dot_dimension_numbers<[1], [0], [0], [1], [0, 0, 1, 1], [], []>} : vector<32x48xbf16>, vector<48x256xbf16>, vector<32x256xf32> -> vector<32x256xf32>
    %c0_19 = arith.constant 0 : index
    %c0_20 = arith.constant 0 : index
    %19 = vector.load %arg4[%c0_19, %c0_20] : memref<1x256xf32, #tpu.memory_space<vmem>>, vector<1x256xf32>
    %20 = vector.broadcast %19 : vector<1x256xf32> to vector<32x256xf32>
    %21 = arith.addf %18, %20 : vector<32x256xf32>
    %cst_21 = arith.constant 0.00999999977 : f32
    %22 = vector.broadcast %cst_21 : f32 to vector<32x256xf32>
    %23 = arith.mulf %22, %21 : vector<32x256xf32>
    %24 = arith.maximumf %21, %23 : vector<32x256xf32>
    %c0_22 = arith.constant 0 : index
    %c0_23 = arith.constant 0 : index
    %25 = vector.load %arg5[%c0_22, %c0_23] : memref<32x256xf32, #tpu.memory_space<vmem>>, vector<32x256xf32>
    tpu.vector_store %arg5[%c0_22, %c0_23], %24 {strides = array<i32>} : memref<32x256xf32, #tpu.memory_space<vmem>>, vector<32x256xf32>,
    return
  }
  func.func @transform_0(%arg0: i32) -> (i32, i32) {
    %c0_i32 = arith.constant 0 : i32
    %c0_i32_0 = arith.constant 0 : i32
    return %arg0, %c0_i32 : i32, i32
  }
  func.func @transform_1(%arg0: i32) -> (i32, i32) {
    %c0_i32 = arith.constant 0 : i32
    %c0_i32_0 = arith.constant 0 : i32
    %c0_i32_1 = arith.constant 0 : i32
    return %c0_i32, %c0_i32_0 : i32, i32
  }
  func.func @transform_2(%arg0: i32) -> (i32, i32, i32) {
    %c0_i32 = arith.constant 0 : i32
    %c0_i32_0 = arith.constant 0 : i32
    %c0_i32_1 = arith.constant 0 : i32
    %c0_i32_2 = arith.constant 0 : i32
    return %c0_i32, %c0_i32_0, %c0_i32_1 : i32, i32, i32
  }
  func.func @transform_3(%arg0: i32) -> (i32, i32) {
    %c0_i32 = arith.constant 0 : i32
    %c0_i32_0 = arith.constant 0 : i32
    %c0_i32_1 = arith.constant 0 : i32
    return %c0_i32, %c0_i32_0 : i32, i32
  }
  func.func @transform_4(%arg0: i32) -> (i32, i32) {
    %c0_i32 = arith.constant 0 : i32
    %c0_i32_0 = arith.constant 0 : i32
    return %arg0, %c0_i32 : i32, i32
  }
}

</mosaic_0001>

<bundles_post_ra>
// kernel: tile.8
= control target key start
LH: loop header
LB: loop body
LE: loop exit
PB: predicated region body
PF: predicated region fallthrough
CT: control target
= control target key end

     0   :  { %s40_s0 = inlined_call_operand.vmem [shape: f32[8], index: 0, kind: input, shape index: {}]   ;;  %s41_s1 = inlined_call_operand.vmem [shape: f32[32,8], index: 1, kind: output, shape index: {}]  }
   0x1   :  { %v4_v0 = vld [vmem:[%s40_s0] ss:$0 sm:$0xff] }
   0x2   :  { %5 = vst [vmem:[%s41_s1] sm:$0xff] %v4_v0  ;;  %12 = vst [vmem:[%s41_s1 + $0x8] sm:$0xff] %v4_v0 }
   0x3   :  { %13 = vst [vmem:[%s41_s1 + $0x10] sm:$0xff] %v4_v0  ;;  %14 = vst [vmem:[%s41_s1 + $0x18] sm:$0xff] %v4_v0 }

// kernel: tile.9
= control target key start
LH: loop header
LB: loop body
LE: loop exit
PB: predicated region body
PF: predicated region fallthrough
CT: control target
= control target key end

     0   :  { %s7_s6 = smov 3  ;;  %s21_s9 = smov 3  ;;  %vm4_vm0 = vcmask 64512   ;;  %vm11_vm1 = vcmask 1048512   ;;  %vm18_vm2 = vcmask 982912   ;;  %vm25_vm3 = vcmask 917312   ;;  %s235_s0 = inlined_call_operand.vmem [shape: f32[32,8], index: 0, kind: input, shape index: {}]   ;;  %s236_s1 = inlined_call_operand.vmem [shape: f32[1,256], index: 1, kind: output, shape index: {}]  }
   0x1   :  { %v125_v0 = vld [vmem:[%s235_s0 + $0xf] ss:$16 sm:%s7_s6]   ;;  %s156_s10 = smov 120   ;;  %v127_v1 = vld [vmem:[%s235_s0 + $0xd] ss:$16 sm:%s21_s9]   ;;  %s14_s13 = smov 3 }
   0x2   :  { %9 = vrot.lane.b32.xlu0 %v125_v0, %s156_s10  ;;  %s157_s14 = smov 104   ;;  %v126_v2 = vld [vmem:[%s235_s0 + $0xe] ss:$16 sm:%s14_s13]   ;;  %s28_s17 = smov 3  ;;  %vm32_vm4 = vcmask 851712   ;;  %vm39_vm5 = vcmask 786112  }
   0x3   :  { %23 = vrot.lane.b32.xlu1 %v127_v1, %s157_s14  ;;  %v128_v3 = vld [vmem:[%s235_s0 + $0xc] ss:$16 sm:%s28_s17]   ;;  %s35_s20 = smov 3  ;;  %s42_s21 = smov 3  ;;  %vm46_vm6 = vcmask 720512   ;;  %vm53_vm7 = vcmask 654912  }
   0x4   :  { %s158_s22 = smov 112   ;;  %s159_s23 = smov 96   ;;  %v129_v4 = vld [vmem:[%s235_s0 + $0xb] ss:$16 sm:%s35_s20]   ;;  %v130_v5 = vld [vmem:[%s235_s0 + $0xa] ss:$16 sm:%s42_s21]  }
   0x5   :  { %s49_s28 = smov 3  ;;  %s56_s29 = smov 3  ;;  %vm60_vm8 = vcmask 589312   ;;  %vm67_vm9 = vcmask 523712   ;;  %vm74_vm10 = vcmask 458112   ;;  %vm81_vm11 = vcmask 392512  }
   0x6   :  { %16 = vrot.lane.b32.xlu0 %v126_v2, %s158_s22  ;;  %s160_s30 = smov 88   ;;  %s161_s2 = smov 80   ;;  %v131_v6 = vld [vmem:[%s235_s0 + $0x9] ss:$16 sm:%s49_s28]   ;;  %vm88_vm12 = vcmask 326912   ;;  %vm95_vm13 = vcmask 261312  }
   0x7   :  { %30 = vrot.lane.b32.xlu1 %v128_v3, %s159_s23  ;;  %v132_v7 = vld [vmem:[%s235_s0 + $0x8] ss:$16 sm:%s56_s29]   ;;  %s63_s7 = smov 3  ;;  %s70_s8 = smov 3  ;;  %vm102_vm14 = vcmask 195712   ;;  %vm109_vm15 = vcmask 130112  }
   0x8   :  { %s162_s9 = smov 72   ;;  %s163_s10 = smov 64   ;;  %v133_v8 = vld [vmem:[%s235_s0 + $0x7] ss:$16 sm:%s63_s7]   ;;  %v134_v9 = vld [vmem:[%s235_s0 + $0x6] ss:$16 sm:%s70_s8]  }
   0x9   :  { %s2_s13 = smov 3  ;;  %s77_s16 = smov 3 }
   0xa   :  { %37 = vrot.lane.b32.xlu0 %v129_v4, %s160_s30  ;;  %v3_v10 = vld [vmem:[%s235_s0] ss:$16 sm:%s2_s13]   ;;  %s84_s19 = smov 3  ;;  %s164_s20 = smov 56  }
   0xb   :  { %44 = vrot.lane.b32.xlu1 %v130_v5, %s161_s2  ;;  %5 = vst.msk [vmem:[#allocation0] ss:$8 sm:$0x3] %vm4_vm0, %v3_v10   ;;  %s165_s21 = smov 48   ;;  %v135_v11 = vld [vmem:[%s235_s0 + $0x5] ss:$16 sm:%s77_s16]  }
   0xc   :  { %v136_v12 = vld [vmem:[%s235_s0 + $0x4] ss:$16 sm:%s84_s19]   ;;  %s91_s26 = smov 3  ;;  %s98_s27 = smov 3 }
   0xd   :  { %s166_s28 = smov 40   ;;  %s167_s29 = smov 32   ;;  %v137_v13 = vld [vmem:[%s235_s0 + $0x3] ss:$16 sm:%s91_s26]   ;;  %v138_v14 = vld [vmem:[%s235_s0 + $0x2] ss:$16 sm:%s98_s27]  }
   0xe   :  { %51 = vrot.lane.b32.xlu0 %v131_v6, %s162_s9  ;;  %s105_s5 = smov 3  ;;  %s168_s6 = smov 24  }
   0xf   :  { %58 = vrot.lane.b32.xlu1 %v132_v7, %s163_s10  ;;  %s169_s7 = smov 16   ;;  %v139_v15 = vld [vmem:[%s235_s0 + $0x1] ss:$16 sm:%s105_s5]   ;;  %s170_s0 = smov 8  }
  0x12   :  { %65 = vrot.lane.b32.xlu0 %v133_v8, %s164_s20 }
  0x13   :  { %72 = vrot.lane.b32.xlu1 %v134_v9, %s165_s21 }
  0x16   :  { %79 = vrot.lane.b32.xlu0 %v135_v11, %s166_s28 }
  0x17   :  { %86 = vrot.lane.b32.xlu1 %v136_v12, %s167_s29 }
  0x1a   :  { %93 = vrot.lane.b32.xlu0 %v137_v13, %s168_s6 }
  0x1b   :  { %100 = vrot.lane.b32.xlu1 %v138_v14, %s169_s7 }
  0x1e   :  { %107 = vrot.lane.b32.xlu0 %v139_v15, %s170_s0 }
  0x74   :  { %v10_v16 = vpop.permute.xlu0 %9  }
  0x75   :  { %12 = vst.msk [vmem:[#allocation0] ss:$8 sm:$0x3] %vm11_vm1, %v10_v16   ;;  %v24_v17 = vpop.permute.xlu1 %23  }
  0x78   :  { %v17_v18 = vpop.permute.xlu0 %16  }
  0x79   :  { %19 = vst.msk [vmem:[#allocation0] ss:$8 sm:$0x3] %vm18_vm2, %v17_v18   ;;  %v31_v19 = vpop.permute.xlu1 %30  }
  0x7a   :  { %26 = vst.msk [vmem:[#allocation0] ss:$8 sm:$0x3] %vm25_vm3, %v24_v17  }
  0x7b   :  { %33 = vst.msk [vmem:[#allocation0] ss:$8 sm:$0x3] %vm32_vm4, %v31_v19  }
  0x7c   :  { %v38_v20 = vpop.permute.xlu0 %37  }
  0x7d   :  { %40 = vst.msk [vmem:[#allocation0] ss:$8 sm:$0x3] %vm39_vm5, %v38_v20   ;;  %v45_v21 = vpop.permute.xlu1 %44  }
  0x7e   :  { %47 = vst.msk [vmem:[#allocation0] ss:$8 sm:$0x3] %vm46_vm6, %v45_v21  }
  0x80   :  { %v52_v22 = vpop.permute.xlu0 %51  }
  0x81   :  { %54 = vst.msk [vmem:[#allocation0] ss:$8 sm:$0x3] %vm53_vm7, %v52_v22   ;;  %v59_v23 = vpop.permute.xlu1 %58  }
  0x82   :  { %61 = vst.msk [vmem:[#allocation0] ss:$8 sm:$0x3] %vm60_vm8, %v59_v23  }
  0x84   :  { %v66_v24 = vpop.permute.xlu0 %65  }
  0x85   :  { %68 = vst.msk [vmem:[#allocation0] ss:$8 sm:$0x3] %vm67_vm9, %v66_v24   ;;  %v73_v25 = vpop.permute.xlu1 %72  }
  0x86   :  { %75 = vst.msk [vmem:[#allocation0] ss:$8 sm:$0x3] %vm74_vm10, %v73_v25  }
  0x88   :  { %v80_v26 = vpop.permute.xlu0 %79  }
  0x89   :  { %82 = vst.msk [vmem:[#allocation0] ss:$8 sm:$0x3] %vm81_vm11, %v80_v26   ;;  %v87_v27 = vpop.permute.xlu1 %86  }
  0x8a   :  { %89 = vst.msk [vmem:[#allocation0] ss:$8 sm:$0x3] %vm88_vm12, %v87_v27  }
  0x8c   :  { %v94_v28 = vpop.permute.xlu0 %93  }
  0x8d   :  { %96 = vst.msk [vmem:[#allocation0] ss:$8 sm:$0x3] %vm95_vm13, %v94_v28   ;;  %v101_v29 = vpop.permute.xlu1 %100  }
  0x8e   :  { %103 = vst.msk [vmem:[#allocation0] ss:$8 sm:$0x3] %vm102_vm14, %v101_v29  }
  0x90   :  { %v108_v30 = vpop.permute.xlu0 %107  }
  0x91   :  { %110 = vst.msk [vmem:[#allocation0] ss:$8 sm:$0x3] %vm109_vm15, %v108_v30  }
  0x98   :  { %v115_v31 = vld [vmem:[#allocation0] sm:$0x1]  ;;  %v120_v32 = vld [vmem:[#allocation0 + $0x8] sm:$0x1] }
  0x99   :  { %118 = vst [vmem:[%s236_s1] sm:$0x1] %v115_v31  ;;  %140 = vst [vmem:[%s236_s1 + $0x1] sm:$0x1] %v120_v32 }

// kernel: upcnl_forward.2
= control target key start
LH: loop header
LB: loop body
LE: loop exit
PB: predicated region body
PF: predicated region fallthrough
CT: control target
= control target key end

     0   :  { %s2535_s20 = smov 0   ;;  %s2728_s0 = inlined_call_operand.vmem [shape: bf16[32,48], index: 0, kind: input, shape index: {}]   ;;  %s2729_s1 = inlined_call_operand.vmem [shape: f32[1,256], index: 1, kind: input, shape index: {}]   ;;  %s2730_s2 = inlined_call_operand.vmem [shape: bf16[3,64,256], index: 2, kind: input, shape index: {}]   ;;  %s2731_s3 = inlined_call_operand.<no memory space> [shape: bf16[], index: 3, kind: input, shape index: {}]   ;;  %s2732_s4 = inlined_call_operand.vmem [shape: bf16[32,64], index: 4, kind: input, shape index: {}]   ;;  %s2733_s5 = inlined_call_operand.vmem [shape: f32[64,256], index: 5, kind: output, shape index: {}]  }
   0x1   :  { %v10_v0 = vstv %s2731_s3 }
   0x2   :  { %v2533_v1 = vunpack.i.l.bf16 %v10_v0 }
   0x3 LB: > { %s2034_s21 = sadd.s32 4294967295, %s2496_s20   ;;  %p2038_p0 = scmp.ge.s32.totalorder %s2496_s20, 1  ;;  %s2496_s20 = sphi %s2535_s20, %s25_s20  }
   0x4   : > { %p174_p1 = scmp.lt.s32.totalorder %s2496_s20, 3 }
   0x6   : > { %p175_p2 = pnand %p2038_p0, %p174_p1 }
   0x8   : > { %178 = sbr.rel (%p175_p2) target bundleno = 506 (0x1fa), region = 36 }
   0xd   : > { %v2545_v2 = vpack.c.bf16 %v2533_v1, %v2533_v1  ;;  %v2550_v3 = vld [vmem:[%s2730_s2 + $0x30] sm:$0xff]   ;;  %v226_v4 = vlaneseq  ;;  %v2555_v5 = vld [vmem:[%s2730_s2 + $0x38] sm:$0xff]   ;;  %v2498_v6 = vmov 0   ;;  %s2039_s25 = sshll.u32 %s2034_s21, 1  ;;  %v2564_v7 = vld [vmem:[%s2730_s2 + $0x20] sm:$0xff]   ;;  %v2499_v23 = vmov 0.0  }
   0xe   : > { %1497 = vmatprep.mubr.bf16.mxu0 %v2498_v6  ;;  %1651 = vmatprep.mubr.bf16.mxu1 %v2498_v6  ;;  %p202_p3 = scmp.lt.s32.totalorder %s2039_s25, 3  ;;  %v2569_v8 = vld [vmem:[%s2730_s2 + $0x28] sm:$0xff]   ;;  %v2576_v10 = vld [vmem:[%s2730_s2 + $0x10] sm:$0xff]   ;;  %v2583_v11 = vld [vmem:[%s2730_s2 + $0x18] sm:$0xff]   ;;  %v2100_v28 = vcombine.high %v2550_v3, %v2555_v5  ;;  %v2099_v33 = vcombine.low %v2550_v3, %v2555_v5  ;;  %vm1892_vm1 = vcmask 392192   ;;  %s2041_s30 = sshll.u32 %s2034_s21, 2 }
   0xf   : > { %v227_v9 = vand.u32 127, %v226_v4  ;;  %1465 = vmatprep.subr.bf16.mxu0 %v2545_v2  ;;  %1619 = vmatprep.subr.bf16.mxu1 %v2545_v2  ;;  %v267_v12 = vld [vmem:[%s2730_s2] sm:$0xff]   ;;  %v2594_v13 = vld [vmem:[%s2730_s2 + $0x8] sm:$0xff]   ;;  %v2454_v15 = vld [vmem:[%s2730_s2 + $0x70] sm:$0xff]   ;;  %v2098_v36 = vcombine.high %v2564_v7, %v2569_v8  ;;  %v2097_v41 = vcombine.low %v2564_v7, %v2569_v8  ;;  %v2096_v44 = vcombine.high %v2576_v10, %v2583_v11  ;;  %p208_p4 = scmp.lt.s32.totalorder %s2041_s30, 7 }
  0x10   : > { %s2735_s25 = smov (!%p202_p3, %s2039_s25), 3  ;;  %1466 = vmatpush1.bf16.msra.mxu0 %v2545_v2  ;;  %1620 = vmatpush1.bf16.msra.mxu1 %v2545_v2  ;;  %273 = vst [vmem:[#allocation14] sm:$0xff] %v267_v12   ;;  %v2455_v18 = vld [vmem:[%s2730_s2 + $0x78] sm:$0xff]   ;;  %v2612_v19 = vld [vmem:[%s2730_s2 + $0xb0] sm:$0xff]   ;;  %v2462_v26 = vld [vmem:[%s2730_s2 + $0x60] sm:$0xff]   ;;  %v2095_v49 = vcombine.low %v2576_v10, %v2583_v11 }
  0x11   : > { %1467 = vmatprep.subr.bf16.mxu0 %v2545_v2  ;;  %s2040_s11 = sshll.u32 %s2735_s25, 2  ;;  %1621 = vmatprep.subr.bf16.mxu1 %v2545_v2  ;;  %vm229_vm0 = vcmp.lt.s32.totalorder %v227_v9, 64  ;;  %v2619_v22 = vld [vmem:[%s2730_s2 + $0xb8] sm:$0xff]   ;;  %v2463_v27 = vld [vmem:[%s2730_s2 + $0x68] sm:$0xff]   ;;  %v2118_v29 = vcombine.high %v2454_v15, %v2455_v18  ;;  %v2636_v30 = vld [vmem:[%s2730_s2 + $0xa0] sm:$0xff]   ;;  %v2117_v34 = vcombine.low %v2454_v15, %v2455_v18  ;;  %s2737_s30 = smov (!%p208_p4, %s2041_s30), 7 }
  0x12   : > { %s205_s16 = scalar_lea.vmem %s2732_s4, %s2040_s11  ;;  %v2641_v31 = vld [vmem:[%s2730_s2 + $0xa8] sm:$0xff]   ;;  %v2470_v32 = vld [vmem:[%s2730_s2 + $0x50] sm:$0xff]   ;;  %v2471_v35 = vld [vmem:[%s2730_s2 + $0x58] sm:$0xff]   ;;  %v2116_v37 = vcombine.high %v2462_v26, %v2463_v27  ;;  %v2115_v43 = vcombine.low %v2462_v26, %v2463_v27  ;;  %v2136_v56 = vcombine.high %v2612_v19, %v2619_v22  ;;  %v2135_v57 = vcombine.low %v2612_v19, %v2619_v22  ;;  %s2159_s8 = sshll.u32 %s2737_s30, 4 }
  0x13   : > { %v223_v14 = vld [vmem:[%s205_s16] sm:$0xff]   ;;  %v2474_v38 = vld [vmem:[%s2730_s2 + $0x90] sm:$0xff]   ;;  %v2475_v39 = vld [vmem:[%s2730_s2 + $0x98] sm:$0xff]   ;;  %v2114_v45 = vcombine.high %v2470_v32, %v2471_v35  ;;  %v2113_v50 = vcombine.low %v2470_v32, %v2471_v35  ;;  %v2134_v58 = vcombine.high %v2636_v30, %v2641_v31  ;;  %v2133_v59 = vcombine.low %v2636_v30, %v2641_v31  ;;  %s2715_s21 = scalar_lea.vmem %s2733_s5, %s2159_s8 }
  0x14   : > { %1468 = vmatpush1.bf16.msra.mxu0 %v2545_v2  ;;  %v224_v16 = vunpack.c.l.bf16 %v223_v14  ;;  %v246_v17 = vunpack.c.h.bf16 %v223_v14  ;;  %1622 = vmatpush1.bf16.msra.mxu1 %v2545_v2  ;;  %v2478_v40 = vld [vmem:[%s2730_s2 + $0x40] sm:$0xff]   ;;  %v2479_v46 = vld [vmem:[%s2730_s2 + $0x48] sm:$0xff]   ;;  %v2132_v60 = vcombine.high %v2474_v38, %v2475_v39  ;;  %v2131_v61 = vcombine.low %v2474_v38, %v2475_v39 }
  0x15   : > { %1469 = vmatprep.subr.bf16.mxu0 %v2545_v2  ;;  %1623 = vmatprep.subr.bf16.mxu1 %v2545_v2  ;;  %v2482_v47 = vld [vmem:[%s2730_s2 + $0x80] sm:$0xff]   ;;  %v2483_v48 = vld [vmem:[%s2730_s2 + $0x88] sm:$0xff]   ;;  %v2112_v52 = vcombine.high %v2478_v40, %v2479_v46  ;;  %v2111_v54 = vcombine.low %v2478_v40, %v2479_v46 }
  0x16   : > { %v230_v20 = vsel %vm229_vm0, %v224_v16, %v2533_v1  ;;  %v252_v21 = vsel %vm229_vm0, %v246_v17, %v2533_v1  ;;  %v2130_v62 = vcombine.high %v2482_v47, %v2483_v48  ;;  %v2129_v63 = vcombine.low %v2482_v47, %v2483_v48  ;;  %v2487_v22 = vld [vmem:[%s2728_s0 + $0x8] sm:$0xff]  }
  0x17   : > { %v231_v24 = vpack.c.bf16 %v2499_v23, %v230_v20  ;;  %v254_v25 = vpack.c.bf16 %v2499_v23, %v252_v21  ;;  %v1363_v42 = vld [vmem:[#allocation14] sm:$0xff]  ;;  %v2486_v21 = vld [vmem:[%s2728_s0] sm:$0xff]   ;;  %v1843_v23 = vshrl.u32 %v226_v4, 7 }
  0x18   : > { %1470 = vmatpush1.bf16.msra.mxu0 %v2545_v2  ;;  %1624 = vmatpush1.bf16.msra.mxu1 %v2545_v2  ;;  %v2094_v51 = vcombine.high %v1363_v42, %v2594_v13  ;;  %v2093_v53 = vcombine.low %v1363_v42, %v2594_v13 }
  0x19   : > { %1471 = vmatprep.subr.bf16.mxu0 %v2545_v2  ;;  %234 = vst [vmem:[#allocation13] sm:$0xf] %v231_v24  ;;  %257 = vst [vmem:[#allocation13 + $0x4] sm:$0xf] %v254_v25  ;;  %1625 = vmatprep.subr.bf16.mxu1 %v2545_v2  ;;  %v1844_v24 = vsub.s32 0, %v1843_v23  ;;  %v1848_v26 = vsub.s32 1, %v1843_v23 }
  0x1a   : > { %v1840_v25 = vld [vmem:[%s2729_s1] sm:$0x3] }
  0x1b   : > { %v1845_v27 = vrot.slane %v1840_v25, %v1844_v24 }
  0x1c   : > { %1472 = vmatpush1.bf16.msra.mxu0 %v2545_v2  ;;  %1626 = vmatpush1.bf16.msra.mxu1 %v2545_v2 }
  0x1d   : > { %1473 = vmatprep.subr.bf16.mxu0 %v2100_v28  ;;  %1627 = vmatprep.subr.bf16.mxu1 %v2118_v29  ;;  %v1849_v28 = vrot.slane %v1840_v25, %v1848_v26 }
  0x20   : > { %1474 = vmatpush1.bf16.msra.mxu0 %v2099_v33  ;;  %1628 = vmatpush1.bf16.msra.mxu1 %v2117_v34  ;;  %v2453_v55 = vld [vmem:[#allocation13] sm:$0xff]  }
  0x21   : > { %1475 = vmatprep.subr.bf16.mxu0 %v2098_v36  ;;  %1629 = vmatprep.subr.bf16.mxu1 %v2116_v37 }
  0x24   : > { %1476 = vmatpush1.bf16.msra.mxu0 %v2097_v41  ;;  %1630 = vmatpush1.bf16.msra.mxu1 %v2115_v43 }
  0x25   : > { %1477 = vmatprep.subr.bf16.mxu0 %v2096_v44  ;;  %1631 = vmatprep.subr.bf16.mxu1 %v2114_v45 }
  0x28   : > { %1478 = vmatpush1.bf16.msra.mxu0 %v2095_v49  ;;  %1632 = vmatpush1.bf16.msra.mxu1 %v2113_v50 }
  0x29   : > { %1479 = vmatprep.subr.bf16.mxu0 %v2094_v51  ;;  %1633 = vmatprep.subr.bf16.mxu1 %v2112_v52 }
  0x2c   : > { %1480 = vmatpush1.bf16.msra.mxu0 %v2093_v53  ;;  %1634 = vmatpush1.bf16.msra.mxu1 %v2111_v54 }
  0x2d   : > { %1773 = vmatprep.subr.bf16.mxu0 %v2545_v2 }
  0x2f   : > { %1498 = vmatmul.mubr.bf16.vlgmr.msra.gmra.mxu0 %v2453_v55  ;;  %1652 = vmatmul.mubr.bf16.vlgmr.msra.gmra.mxu1 %v2453_v55 }
  0x30   : > { %1774 = vmatpush1.bf16.msra.mxu0 %v2545_v2  ;;  %1805 = vmatprep.mubr.bf16.mxu0 %v2498_v6 }
  0x31   : > { %1775 = vmatprep.subr.bf16.mxu0 %v2545_v2  ;;  %1931 = vmatprep.mubr.bf16.mxu1 %v2498_v6 }
  0x34   : > { %1776 = vmatpush1.bf16.msra.mxu0 %v2545_v2 }
  0x35   : > { %1777 = vmatprep.subr.bf16.mxu0 %v2545_v2 }
  0x38   : > { %1778 = vmatpush1.bf16.msra.mxu0 %v2545_v2 }
  0x39   : > { %1779 = vmatprep.subr.bf16.mxu0 %v2545_v2 }
  0x3c   : > { %1780 = vmatpush1.bf16.msra.mxu0 %v2545_v2 }
  0x3d   : > { %1781 = vmatprep.subr.bf16.mxu0 %v2136_v56 }
  0x40   : > { %1782 = vmatpush1.bf16.msra.mxu0 %v2135_v57 }
  0x41   : > { %1783 = vmatprep.subr.bf16.mxu0 %v2134_v58 }
  0x44   : > { %1784 = vmatpush1.bf16.msra.mxu0 %v2133_v59 }
  0x45   : > { %1785 = vmatprep.subr.bf16.mxu0 %v2132_v60 }
  0x48   : > { %1786 = vmatpush1.bf16.msra.mxu0 %v2131_v61 }
  0x49   : > { %1787 = vmatprep.subr.bf16.mxu0 %v2130_v62 }
  0x4c   : > { %1788 = vmatpush1.bf16.msra.mxu0 %v2129_v63 }
  0x4f   : > { %1806 = vmatmul.mubr.bf16.vlgmr.msra.gmra.mxu0 %v2453_v55 }
  0xef   : > { %v1499_v0 = vpop.f32.mrf.mxu0  ;;  %v1653_v5 = vpop.f32.mrf.mxu1 }
  0xf1   : > { %v1501_v2 = vpop.f32.mrf.mxu0  ;;  %v1655_v8 = vpop.f32.mrf.mxu1 }
  0xf3   : > { %v1503_v3 = vpop.f32.mrf.mxu0  ;;  %v1657_v10 = vpop.f32.mrf.mxu1 }
  0xf4   : > { %v2426_v18 = vpack.c.bf16 %v1657_v10, %v1653_v5  ;;  %v2424_v20 = vpack.c.bf16 %v1503_v3, %v1499_v0 }
  0xf5   : > { %v1505_v7 = vpop.f32.mrf.mxu0  ;;  %v1659_v13 = vpop.f32.mrf.mxu1 }
  0xf6   : > { %v2427_v17 = vpack.c.bf16 %v1659_v13, %v1655_v8  ;;  %v2425_v19 = vpack.c.bf16 %v1505_v7, %v1501_v2 }
 0x10f   : > { %v1807_v9 = vpop.f32.mrf.mxu0 }
 0x111   : > { %v1809_v11 = vpop.f32.mrf.mxu0 }
 0x113   : > { %v1811_v12 = vpop.f32.mrf.mxu0 }
 0x114   : > { %v2428_v16 = vpack.c.bf16 %v1811_v12, %v1807_v9 }
 0x115   : > { %v1813_v14 = vpop.f32.mrf.mxu0 }
 0x116   : > { %v2429_v15 = vpack.c.bf16 %v1813_v14, %v1809_v11 }
 0x118   : > { %1909 = vmatprep.subr.bf16.mxu1 %v2429_v15 }
 0x119   : > { %1910 = vmatpush1.bf16.msra.mxu1 %v2428_v16 }
 0x11a   : > { %1911 = vmatprep.subr.bf16.mxu1 %v2427_v17 }
 0x11d   : > { %1912 = vmatpush1.bf16.msra.mxu1 %v2426_v18 }
 0x11e   : > { %1913 = vmatprep.subr.bf16.mxu1 %v2425_v19 }
 0x121   : > { %1914 = vmatpush1.bf16.msra.mxu1 %v2424_v20 }
 0x124   : > { %2155 = vmatmul.mubr.msk.bf16.vlgmr.msra.gmra.mxu1 %vm1892_vm1, %v2486_v21 }
 0x125   : > { %1941 = vmatprep.mubr.bf16.mxu1 %v2498_v6 }
 0x12c   : > { %2156 = vmatmul.mubr.msk.bf16.gmra.mxu1 %vm1892_vm1, %v2487_v22 }
 0x1e4   : > { %v1933_v6 = vpop.f32.mrf.mxu1 }
 0x1e5   : > { %v1934_v29 = vadd.f32 %v1933_v6, %v1845_v27 }
 0x1e6   : > { %v1935_v30 = vpop.f32.mrf.mxu1 }
 0x1e7   : > { %v1952_v31 = vmul.f32 0.01, %v1934_v29  ;;  %v1936_v32 = vadd.f32 %v1935_v30, %v1849_v28 }
 0x1e8   : > { %v1937_v4 = vpop.f32.mrf.mxu1 }
 0x1e9   : > { %v1960_v33 = vmax.f32 %v1934_v29, %v1952_v31  ;;  %v1953_v34 = vmul.f32 0.01, %v1936_v32  ;;  %v1938_v35 = vadd.f32 %v1937_v4, %v1845_v27 }
 0x1ea   : > { %v1939_v36 = vpop.f32.mrf.mxu1 }
 0x1eb   : > { %1968 = vst [vmem:[%s2715_s21] sm:$0xff] %v1960_v33  ;;  %v1961_v37 = vmax.f32 %v1936_v32, %v1953_v34  ;;  %v1954_v38 = vmul.f32 0.01, %v1938_v35  ;;  %v1940_v39 = vadd.f32 %v1939_v36, %v1849_v28 }
 0x1ec   : > { %v1943_v40 = vpop.f32.mrf.mxu1 }
 0x1ed   : > { %1969 = vst [vmem:[%s2715_s21 + $0x8] sm:$0xff] %v1961_v37  ;;  %v1962_v41 = vmax.f32 %v1938_v35, %v1954_v38  ;;  %v1955_v42 = vmul.f32 0.01, %v1940_v39  ;;  %v1944_v43 = vadd.f32 %v1943_v40, %v1845_v27 }
 0x1ee   : > { %v1945_v44 = vpop.f32.mrf.mxu1 }
 0x1ef   : > { %1970 = vst [vmem:[%s2715_s21 + $0x10] sm:$0xff] %v1962_v41  ;;  %v1963_v45 = vmax.f32 %v1940_v39, %v1955_v42  ;;  %v1956_v46 = vmul.f32 0.01, %v1944_v43  ;;  %v1946_v47 = vadd.f32 %v1945_v44, %v1849_v28 }
 0x1f0   : > { %v1947_v48 = vpop.f32.mrf.mxu1 }
 0x1f1   : > { %1971 = vst [vmem:[%s2715_s21 + $0x18] sm:$0xff] %v1963_v45  ;;  %v1964_v49 = vmax.f32 %v1944_v43, %v1956_v46  ;;  %v1957_v50 = vmul.f32 0.01, %v1946_v47  ;;  %v1948_v51 = vadd.f32 %v1947_v48, %v1845_v27 }
 0x1f2   : > { %v1949_v52 = vpop.f32.mrf.mxu1 }
 0x1f3   : > { %1972 = vst [vmem:[%s2715_s21 + $0x20] sm:$0xff] %v1964_v49  ;;  %v1965_v53 = vmax.f32 %v1946_v47, %v1957_v50  ;;  %v1958_v54 = vmul.f32 0.01, %v1948_v51  ;;  %v1950_v55 = vadd.f32 %v1949_v52, %v1849_v28 }
 0x1f5   : > { %1973 = vst [vmem:[%s2715_s21 + $0x28] sm:$0xff] %v1965_v53  ;;  %v1966_v56 = vmax.f32 %v1948_v51, %v1958_v54  ;;  %v1959_v57 = vmul.f32 0.01, %v1950_v55 }
 0x1f7   : > { %1974 = vst [vmem:[%s2715_s21 + $0x30] sm:$0xff] %v1966_v56  ;;  %v1967_v58 = vmax.f32 %v1950_v55, %v1959_v57 }
 0x1f9   : > { %1975 = vst [vmem:[%s2715_s21 + $0x38] sm:$0xff] %v1967_v58 }
 0x1fa PF: > { %s25_s20 = sadd.s32 1, %s2496_s20  }
 0x1fb   : > { %p22_p5 = scmp.ge.s32.totalorder %s25_s20, 4  }
 0x1fd   :  { %24 = sbr.rel (!%p22_p5) target bundleno = 3 (0x3), region = 212 }

</bundles_post_ra>
